<compile_context>
chip_gen: v7x
topology: tpu7x:2x2x1
jax: 0.10.0
libtpu: 0.0.40
codegen_flags: <defaults>
</compile_context>

<pallas_src>
import functools

import jax
import jax.numpy as jnp
from jax.experimental import pallas as pl
from jax.experimental.pallas import tpu as pltpu


def _round_up(x: int, m: int) -> int:
    return (x + m - 1) // m * m


def _fused_mlp_kernel(*refs, n_layers: int, relu_flags):
    """Fused MLP forward for one batch tile.

    refs = (x_ref, w0_ref, b0_ref, ..., w_{L-1}_ref, b_{L-1}_ref, o_ref)
      x_ref : (tile_m, K_in)          f32 activations
      w_ref : (K_l, N_l)              bf16 weight (pre-transposed: y = x @ W)
      b_ref : (1, N_l)                f32 bias
      o_ref : (tile_m, N_out_padded)  f32 output
    Intermediates stay in VMEM/vregs for the whole chain.
    """
    x_ref = refs[0]
    o_ref = refs[-1]

    h = x_ref[...]
    for l in range(n_layers):
        w = refs[1 + 2 * l][...]
        b = refs[2 + 2 * l][...]
        # MXU matmul in the weight's storage dtype (bf16), f32 accumulation.
        y = jnp.dot(h.astype(w.dtype), w, preferred_element_type=jnp.float32)
        # Epilogue (bias add + optional ReLU) in f32.
        y = y + b.astype(jnp.float32)
        if relu_flags[l]:
            y = jnp.maximum(y, 0.0)
        h = y
    o_ref[...] = h.astype(o_ref.dtype)


def init_mlp_params(key, layer_cfg, weight_dtype=jnp.bfloat16):
    """Deterministic init mimicking PyTorch nn.Linear (uniform +-1/sqrt(fan_in)).

    Returns list of (W[K, N], b[N]) with W already transposed for x @ W.
    Weights are stored in `weight_dtype` (bf16 by default), biases in f32.
    """
    params = []
    for i_dim, o_dim in zip(layer_cfg[:-1], layer_cfg[1:]):
        key, kw, kb = jax.random.split(key, 3)
        bound = 1.0 / jnp.sqrt(jnp.float32(i_dim))
        w = jax.random.uniform(kw, (i_dim, o_dim), jnp.float32, -bound, bound)
        b = jax.random.uniform(kb, (o_dim,), jnp.float32, -bound, bound)
        params.append((w.astype(weight_dtype), b))
    return params


def mlp_forward(x, params, non_linears, dropouts=None, *,
                tile_m: int = 512, out_dtype=jnp.float32):
    """Functional equivalent of MLP_Model.forward (eval mode: dropout = identity)."""
    del dropouts  # identity in eval mode
    n_layers = len(params)
    assert len(non_linears) == n_layers

    M, K_in = x.shape
    N_out = params[-1][0].shape[1]

    # --- Lane-dense final output: pad last-layer W/b to a multiple of 128. ---
    LANE = 128
    N_pad = _round_up(N_out, LANE)
    fused_params = []
    for idx, (w, b) in enumerate(params):
        if idx == n_layers - 1 and N_pad != N_out:
            w = jnp.pad(w, ((0, 0), (0, N_pad - N_out)))
            b = jnp.pad(b, ((0, N_pad - N_out),))
        fused_params.append((w, b.reshape(1, -1)))

    # --- Batch tiling: pad M to a sublane multiple and pick the M tile. ---
    SUBLANE = 8
    M_pad8 = _round_up(M, SUBLANE)
    tile = max(SUBLANE, min(_round_up(tile_m, SUBLANE), M_pad8))
    M_pad = _round_up(M_pad8, tile)
    if M_pad != M:
        x = jnp.pad(x, ((0, M_pad - M), (0, 0)))

    grid = (pl.cdiv(M_pad, tile),)

    # Activations/output move with the grid; weights/biases are pinned (same
    # block for every grid step -> DMA'd once, VMEM-resident).
    in_specs = [pl.BlockSpec((tile, K_in), lambda i: (i, 0))]
    flat_inputs = [x]
    for (w, b2) in fused_params:
        kd, nd = w.shape
        in_specs.append(pl.BlockSpec((kd, nd), lambda i: (0, 0)))
        in_specs.append(pl.BlockSpec((1, nd), lambda i: (0, 0)))
        flat_inputs.extend([w, b2])

    out_spec = pl.BlockSpec((tile, N_pad), lambda i: (i, 0))

    kernel = functools.partial(
        _fused_mlp_kernel,
        n_layers=n_layers,
        relu_flags=tuple(int(f) == 1 for f in non_linears),
    )

    out = pl.pallas_call(
        kernel,
        out_shape=jax.ShapeDtypeStruct((M_pad, N_pad), out_dtype),
        grid=grid,
        in_specs=in_specs,
        out_specs=out_spec,
        compiler_params=pltpu.CompilerParams(
            dimension_semantics=("parallel",),  # megacore sharding on v7x
        ),
    )(*flat_inputs)

    return out[:M, :N_out]


def _mlp_forward_ref(x, params, non_linears):
    """Pure-JAX reference with identical numerics (bf16 operands, f32 acc)."""
    h = x
    for (w, b), apply_fn in zip(params, non_linears):
        y = jnp.dot(h.astype(w.dtype), w, preferred_element_type=jnp.float32)
        y = y + b.astype(jnp.float32)
        if apply_fn == 1:
            y = jnp.maximum(y, 0.0)
        h = y
    return h


if __name__ == "__main__":
    # Module configuration (synthetic, deterministic).
    layer_cfg = [32, 64, 64, 16]      # three Linear blocks: 32->64->64->16
    non_linears = [1, 1, 0]           # ReLU, ReLU, Identity
    dropouts = [0.1, 0.2, 0.0]        # eval mode -> identity

    key = jax.random.PRNGKey(0)
    key_params, key_x = jax.random.split(key)

    params = init_mlp_params(key_params, layer_cfg)

    batch = 8
    x = jax.random.normal(key_x, (batch, layer_cfg[0]), jnp.float32)

    fwd = jax.jit(lambda x: mlp_forward(x, params, non_linears, dropouts))
    out = fwd(x)
    jax.block_until_ready(out)

    assert out.shape == (batch, layer_cfg[-1]), out.shape
    assert out.dtype == jnp.float32, out.dtype

    ref = _mlp_forward_ref(x, params, non_linears)
    assert jnp.allclose(out, ref, rtol=1e-3, atol=1e-3), float(
        jnp.max(jnp.abs(out - ref)))

    print("KERNEL_OK")
</pallas_src>

<mosaic_0001>
module attributes {stable_mosaic.version = 11 : i64} {
  func.func @_fused_mlp_kernel(%arg0: i32, %arg1: memref<8x32xf32, #tpu.memory_space<vmem>>, %arg2: memref<32x64xbf16, #tpu.memory_space<vmem>>, %arg3: memref<1x64xf32, #tpu.memory_space<vmem>>, %arg4: memref<64x64xbf16, #tpu.memory_space<vmem>>, %arg5: memref<1x64xf32, #tpu.memory_space<vmem>>, %arg6: memref<64x128xbf16, #tpu.memory_space<vmem>>, %arg7: memref<1x128xf32, #tpu.memory_space<vmem>>, %arg8: memref<8x128xf32, #tpu.memory_space<vmem>>) attributes {dimension_semantics = [#tpu.dimension_semantics<parallel>], iteration_bounds = array<i64: 1>, scalar_prefetch = 0 : i64, scratch_operands = 0 : i64, tpu.core_type = #tpu.core_type<tc>, window_params = [{transform_indices = @transform_0, window_bounds = array<i64: 8, 32>}, {pipeline_mode = #tpu.pipeline_mode<synchronous>, transform_indices = @transform_1, window_bounds = array<i64: 32, 64>}, {pipeline_mode = #tpu.pipeline_mode<synchronous>, transform_indices = @transform_2, window_bounds = array<i64: 1, 64>}, {pipeline_mode = #tpu.pipeline_mode<synchronous>, transform_indices = @transform_3, window_bounds = array<i64: 64, 64>}, {pipeline_mode = #tpu.pipeline_mode<synchronous>, transform_indices = @transform_4, window_bounds = array<i64: 1, 64>}, {pipeline_mode = #tpu.pipeline_mode<synchronous>, transform_indices = @transform_5, window_bounds = array<i64: 64, 128>}, {pipeline_mode = #tpu.pipeline_mode<synchronous>, transform_indices = @transform_6, window_bounds = array<i64: 1, 128>}, {transform_indices = @transform_7, window_bounds = array<i64: 8, 128>}]} {
    %c0 = arith.constant 0 : index
    %c0_0 = arith.constant 0 : index
    %0 = vector.load %arg1[%c0, %c0_0] : memref<8x32xf32, #tpu.memory_space<vmem>>, vector<8x32xf32>
    %c0_1 = arith.constant 0 : index
    %c0_2 = arith.constant 0 : index
    %1 = vector.load %arg2[%c0_1, %c0_2] : memref<32x64xbf16, #tpu.memory_space<vmem>>, vector<32x64xbf16>
    %c0_3 = arith.constant 0 : index
    %c0_4 = arith.constant 0 : index
    %2 = vector.load %arg3[%c0_3, %c0_4] : memref<1x64xf32, #tpu.memory_space<vmem>>, vector<1x64xf32>
    %3 = arith.truncf %0 : vector<8x32xf32> to vector<8x32xbf16>
    %cst = arith.constant dense<0.000000e+00> : vector<8x64xf32>
    %4 = tpu.matmul %3, %1, %cst {dimension_numbers = #tpu.dot_dimension_numbers<[1], [0], [0], [1], [0, 0, 1, 1], [], []>} : vector<8x32xbf16>, vector<32x64xbf16>, vector<8x64xf32> -> vector<8x64xf32>
    %5 = vector.broadcast %2 : vector<1x64xf32> to vector<8x64xf32>
    %6 = arith.addf %4, %5 : vector<8x64xf32>
    %cst_5 = arith.constant 0.000000e+00 : f32
    %7 = vector.broadcast %cst_5 : f32 to vector<8x64xf32>
    %8 = arith.maximumf %6, %7 : vector<8x64xf32>
    %c0_6 = arith.constant 0 : index
    %c0_7 = arith.constant 0 : index
    %9 = vector.load %arg4[%c0_6, %c0_7] : memref<64x64xbf16, #tpu.memory_space<vmem>>, vector<64x64xbf16>
    %c0_8 = arith.constant 0 : index
    %c0_9 = arith.constant 0 : index
    %10 = vector.load %arg5[%c0_8, %c0_9] : memref<1x64xf32, #tpu.memory_space<vmem>>, vector<1x64xf32>
    %11 = arith.truncf %8 : vector<8x64xf32> to vector<8x64xbf16>
    %cst_10 = arith.constant dense<0.000000e+00> : vector<8x64xf32>
    %12 = tpu.matmul %11, %9, %cst_10 {dimension_numbers = #tpu.dot_dimension_numbers<[1], [0], [0], [1], [0, 0, 1, 1], [], []>} : vector<8x64xbf16>, vector<64x64xbf16>, vector<8x64xf32> -> vector<8x64xf32>
    %13 = vector.broadcast %10 : vector<1x64xf32> to vector<8x64xf32>
    %14 = arith.addf %12, %13 : vector<8x64xf32>
    %cst_11 = arith.constant 0.000000e+00 : f32
    %15 = vector.broadcast %cst_11 : f32 to vector<8x64xf32>
    %16 = arith.maximumf %14, %15 : vector<8x64xf32>
    %c0_12 = arith.constant 0 : index
    %c0_13 = arith.constant 0 : index
    %17 = vector.load %arg6[%c0_12, %c0_13] : memref<64x128xbf16, #tpu.memory_space<vmem>>, vector<64x128xbf16>
    %c0_14 = arith.constant 0 : index
    %c0_15 = arith.constant 0 : index
    %18 = vector.load %arg7[%c0_14, %c0_15] : memref<1x128xf32, #tpu.memory_space<vmem>>, vector<1x128xf32>
    %19 = arith.truncf %16 : vector<8x64xf32> to vector<8x64xbf16>
    %cst_16 = arith.constant dense<0.000000e+00> : vector<8x128xf32>
    %20 = tpu.matmul %19, %17, %cst_16 {dimension_numbers = #tpu.dot_dimension_numbers<[1], [0], [0], [1], [0, 0, 1, 1], [], []>} : vector<8x64xbf16>, vector<64x128xbf16>, vector<8x128xf32> -> vector<8x128xf32>
    %21 = vector.broadcast %18 : vector<1x128xf32> to vector<8x128xf32>
    %22 = arith.addf %20, %21 : vector<8x128xf32>
    %c0_17 = arith.constant 0 : index
    %c0_18 = arith.constant 0 : index
    %23 = vector.load %arg8[%c0_17, %c0_18] : memref<8x128xf32, #tpu.memory_space<vmem>>, vector<8x128xf32>
    tpu.vector_store %arg8[%c0_17, %c0_18], %22 {strides = array<i32>} : memref<8x128xf32, #tpu.memory_space<vmem>>, vector<8x128xf32>,
    return
  }
  func.func @transform_0(%arg0: i32) -> (i32, i32) {
    %c0_i32 = arith.constant 0 : i32
    %c0_i32_0 = arith.constant 0 : i32
    return %arg0, %c0_i32 : i32, i32
  }
  func.func @transform_1(%arg0: i32) -> (i32, i32) {
    %c0_i32 = arith.constant 0 : i32
    %c0_i32_0 = arith.constant 0 : i32
    %c0_i32_1 = arith.constant 0 : i32
    return %c0_i32, %c0_i32_0 : i32, i32
  }
  func.func @transform_2(%arg0: i32) -> (i32, i32) {
    %c0_i32 = arith.constant 0 : i32
    %c0_i32_0 = arith.constant 0 : i32
    %c0_i32_1 = arith.constant 0 : i32
    return %c0_i32, %c0_i32_0 : i32, i32
  }
  func.func @transform_3(%arg0: i32) -> (i32, i32) {
    %c0_i32 = arith.constant 0 : i32
    %c0_i32_0 = arith.constant 0 : i32
    %c0_i32_1 = arith.constant 0 : i32
    return %c0_i32, %c0_i32_0 : i32, i32
  }
  func.func @transform_4(%arg0: i32) -> (i32, i32) {
    %c0_i32 = arith.constant 0 : i32
    %c0_i32_0 = arith.constant 0 : i32
    %c0_i32_1 = arith.constant 0 : i32
    return %c0_i32, %c0_i32_0 : i32, i32
  }
  func.func @transform_5(%arg0: i32) -> (i32, i32) {
    %c0_i32 = arith.constant 0 : i32
    %c0_i32_0 = arith.constant 0 : i32
    %c0_i32_1 = arith.constant 0 : i32
    return %c0_i32, %c0_i32_0 : i32, i32
  }
  func.func @transform_6(%arg0: i32) -> (i32, i32) {
    %c0_i32 = arith.constant 0 : i32
    %c0_i32_0 = arith.constant 0 : i32
    %c0_i32_1 = arith.constant 0 : i32
    return %c0_i32, %c0_i32_0 : i32, i32
  }
  func.func @transform_7(%arg0: i32) -> (i32, i32) {
    %c0_i32 = arith.constant 0 : i32
    %c0_i32_0 = arith.constant 0 : i32
    return %arg0, %c0_i32 : i32, i32
  }
}

</mosaic_0001>

<bundles_post_ra>
// kernel: _lambda_.1
= control target key start
LH: loop header
LB: loop body
LE: loop exit
PB: predicated region body
PF: predicated region fallthrough
CT: control target
= control target key end

     0   :  { %12 = vsyncpa [#allocation3], 0  ;;  %s671_s0 = inlined_call_operand.hbm [shape: f32[8,32], index: 0, kind: input, shape index: {}]   ;;  %s672_s1 = inlined_call_operand.hbm [shape: bf16[32,64], index: 1, kind: input, shape index: {}]   ;;  %s673_s2 = inlined_call_operand.hbm [shape: f32[1,64], index: 2, kind: input, shape index: {}]   ;;  %s674_s3 = inlined_call_operand.hbm [shape: bf16[64,64], index: 3, kind: input, shape index: {}]   ;;  %s675_s4 = inlined_call_operand.vmem [shape: f32[1,64], index: 4, kind: input, shape index: {}]   ;;  %s676_s5 = inlined_call_operand.vmem [shape: bf16[64,128], index: 5, kind: input, shape index: {}]   ;;  %s677_s6 = inlined_call_operand.vmem [shape: f32[1,128], index: 6, kind: input, shape index: {}]   ;;  %s678_s7 = inlined_call_operand.hbm [shape: f32[8,128], index: 7, kind: output, shape index: {}]  }
   0x1   :  { %13 = vsyncpa [#allocation6], 0 }
   0x2   :  { %14 = vsyncpa [#allocation9], 0 }
   0x3   :  { %15 = vsyncpa [#allocation4], 0  ;;  %s533_s24 = smov [#allocation5]   ;;  %s415_s28 = scalar_lea.hbm %s672_s1, 256 }
   0x4   :  { %s31_s25 = sshll.u32 %s533_s24, 4  ;;  %p416_p0 = scmp.ne.s32.totalorder %s672_s1, %s415_s28  ;;  %s32_s25 = int_to_ptr.vmem [resolvable:$true] %s31_s25 }
   0x5   :  { %p419_p1 = scmp.lt.u32.totalorder %s415_s28, %s672_s1 }
   0x7   :  { %p421_p2 = pnand %p419_p1, %p416_p0 }
   0x9   :  { %424 = shalt.err (!%p421_p2)
}
   0xa   :  { %s425_s10 = scalar_lea.vmem %s32_s25, 256  ;;  %p430_p4 = scmp.lt.s32.totalorder %s32_s25, %s32_s25 }
   0xb   :  { %p426_p3 = scmp.ne.s32.totalorder %s32_s25, %s425_s10  ;;  %p431_p5 = scmp.lt.s32.totalorder %s425_s10, %s425_s10 }
   0xd   :  { %p432_p6 = por %p431_p5, %p430_p4 }
   0xf   :  { %p433_p7 = pnand %p432_p6, %p426_p3 }
  0x11   :  { %436 = shalt.err (!%p433_p7)
}
  0x12   :  { %s534_s11 = smov 64   ;;  %s535_s12 = smov 4  }
  0x13   :  { %37 = dma.hbm_to_vmem [thread:$0]  %s672_s1, 256, %s32_s25, [#allocation6], %s534_s11, %s534_s11, %s535_s12  }
  0x14   :  { %s536_s15 = smov [#allocation2]   ;;  %s537_s17 = smov [#allocation7]  }
  0x15   :  { %s22_s16 = sshll.u32 %s536_s15, 4  ;;  %s44_s18 = sshll.u32 %s537_s17, 4  ;;  %s23_s16 = int_to_ptr.vmem [resolvable:$true] %s22_s16  ;;  %s45_s18 = int_to_ptr.vmem [resolvable:$true] %s44_s18 }
  0x16   :  { %s437_s21 = scalar_lea.hbm %s671_s0, 128 }
  0x17   :  { %p438_p8 = scmp.ne.s32.totalorder %s671_s0, %s437_s21  ;;  %p441_p9 = scmp.lt.u32.totalorder %s437_s21, %s671_s0 }
  0x19   :  { %p443_p10 = pnand %p441_p9, %p438_p8 }
  0x1b   :  { %446 = shalt.err (!%p443_p10)
}
  0x1c   :  { %s447_s1 = scalar_lea.vmem %s23_s16, 128  ;;  %p452_p12 = scmp.lt.s32.totalorder %s23_s16, %s23_s16 }
  0x1d   :  { %p448_p11 = scmp.ne.s32.totalorder %s23_s16, %s447_s1  ;;  %p453_p13 = scmp.lt.s32.totalorder %s447_s1, %s447_s1 }
  0x1f   :  { %p454_p0 = por %p453_p13, %p452_p12 }
  0x21   :  { %p455_p1 = pnand %p454_p0, %p448_p11 }
  0x23   :  { %458 = shalt.err (!%p455_p1)
}
  0x24   :  { %25 = dma.hbm_to_vmem [thread:$0]  %s671_s0, 128, %s23_s16, [#allocation3]  }
  0x25   :  { %s459_s30 = scalar_lea.hbm %s673_s2, 16 }
  0x26   :  { %p460_p2 = scmp.ne.s32.totalorder %s673_s2, %s459_s30  ;;  %p463_p3 = scmp.lt.u32.totalorder %s459_s30, %s673_s2 }
  0x28   :  { %p465_p4 = pnand %p463_p3, %p460_p2 }
  0x2a   :  { %468 = shalt.err (!%p465_p4)
}
  0x2b   :  { %s469_s14 = scalar_lea.vmem %s45_s18, 16  ;;  %s473_s15 = scalar_lea.vmem %s45_s18, 32 }
  0x2c   :  { %p470_p5 = scmp.ne.s32.totalorder %s45_s18, %s469_s14  ;;  %p474_p6 = scmp.lt.s32.totalorder %s45_s18, %s45_s18 }
  0x2d   :  { %p475_p7 = scmp.lt.s32.totalorder %s473_s15, %s469_s14 }
  0x2f   :  { %p476_p8 = por %p475_p7, %p474_p6 }
  0x31   :  { %p477_p9 = pnand %p476_p8, %p470_p5 }
  0x33   :  { %480 = shalt.err (!%p477_p9)
}
  0x34   :  { %47 = dma.hbm_to_vmem [thread:$0]  %s673_s2, 16, %s45_s18, [#allocation6]  }
  0x35   :  { %s538_s17 = smov [#allocation8]   ;;  %s481_s22 = scalar_lea.hbm %s674_s3, 512 }
  0x36   :  { %s53_s19 = sshll.u32 %s538_s17, 4  ;;  %p482_p10 = scmp.ne.s32.totalorder %s674_s3, %s481_s22  ;;  %s54_s19 = int_to_ptr.vmem [resolvable:$true] %s53_s19 }
  0x37   :  { %p485_p11 = scmp.lt.u32.totalorder %s481_s22, %s674_s3 }
  0x39   :  { %p487_p12 = pnand %p485_p11, %p482_p10 }
  0x3b   :  { %490 = shalt.err (!%p487_p12)
}
  0x3c   :  { %s491_s25 = scalar_lea.vmem %s54_s19, 512  ;;  %p496_p0 = scmp.lt.s32.totalorder %s54_s19, %s54_s19 }
  0x3d   :  { %p492_p13 = scmp.ne.s32.totalorder %s54_s19, %s491_s25  ;;  %p497_p1 = scmp.lt.s32.totalorder %s491_s25, %s491_s25 }
  0x3f   :  { %p498_p2 = por %p497_p1, %p496_p0 }
  0x41   :  { %p499_p3 = pnand %p498_p2, %p492_p13 }
  0x43   :  { %502 = shalt.err (!%p499_p3)
}
  0x44   :  { %59 = dma.hbm_to_vmem [thread:$0]  %s674_s3, 512, %s54_s19, [#allocation9], %s534_s11, %s534_s11, %s535_s12  }
  0x45   :  { %525 = dma.done.wait [#allocation3], 128  }
  0x46   :  { %526 = vsyncadd [#allocation3], 4294967168 }
  0x47   :  { %527 = dma.done.wait [#allocation6], 272  }
  0x48   :  { %528 = vsyncadd [#allocation6], 4294967024 }
  0x49   :  { %529 = dma.done.wait [#allocation9], 512  }
  0x4a   :  { %530 = vsyncadd [#allocation9], 4294966784  ;;  %v539_v0 = vmov 0.0   ;;  %vm540_vm0 = vmmov 0   ;;  %v405_v1 = vld [vmem:[#allocation5] sm:$0xff]   ;;  %v406_v2 = vld [vmem:[#allocation5 + $0x8] sm:$0xff]  }
  0x4b   :  { %364 = vmatprep.subr.bf16.mxu0 %v539_v0  ;;  %368 = vmatprep.mubr.msk.bf16.mxu0 %vm540_vm0, %v539_v0  ;;  %v79_v3 = vld [vmem:[#allocation2] sm:$0xff]  ;;  %vm104_vm1 = vcmask 261120   ;;  %v409_v7 = vld [vmem:[#allocation8 + $0x10] sm:$0xff]   ;;  %v410_v8 = vld [vmem:[#allocation8 + $0x18] sm:$0xff]   ;;  %vm189_vm2 = vcmask 523264   ;;  %s541_s15 = smov [#allocation10]  }
  0x4c   :  { %372 = vmatprep.subr.bf16.mxu1 %v539_v0  ;;  %380 = vmatprep.mubr.msk.bf16.mxu1 %vm540_vm0, %v539_v0  ;;  %v407_v4 = vld [vmem:[#allocation8] sm:$0xff]   ;;  %v408_v5 = vld [vmem:[#allocation8 + $0x8] sm:$0xff]   ;;  %v85_v6 = vpack.c.bf16 %v79_v3, %v79_v3  ;;  %v335_v11 = vld [vmem:[#allocation7] ss:$0 sm:$0xff] }
  0x4d   :  { %365 = vmatpush3.bf16.msra.mxu0 %v405_v1  ;;  %373 = vmatpush3.bf16.msra.mxu1 %v407_v4  ;;  %v411_v9 = vld [vmem:[%s676_s5] sm:$0xff]   ;;  %v412_v10 = vld [vmem:[%s676_s5 + $0x8] sm:$0xff]   ;;  %v413_v19 = vld [vmem:[%s676_s5 + $0x10] sm:$0xff]  }
  0x4e   :  { %366 = vmatprep.subr.bf16.mxu0 %v539_v0  ;;  %374 = vmatprep.subr.bf16.mxu1 %v539_v0  ;;  %v414_v20 = vld [vmem:[%s676_s5 + $0x18] sm:$0xff]   ;;  %v339_v21 = vld [vmem:[%s675_s4] ss:$0 sm:$0xff]  ;;  %s324_s5 = sshll.u32 %s541_s15, 4  ;;  %s325_s5 = int_to_ptr.vmem [resolvable:$true] %s324_s5 }
  0x4f   :  { %v345_v29 = vld [vmem:[%s677_s6] ss:$0 sm:$0xff]  ;;  %s503_s4 = scalar_lea.vmem %s325_s5, 128  ;;  %p508_p5 = scmp.lt.s32.totalorder %s325_s5, %s325_s5 }
  0x50   :  { %p504_p4 = scmp.ne.s32.totalorder %s325_s5, %s503_s4  ;;  %p509_p6 = scmp.lt.s32.totalorder %s503_s4, %s503_s4 }
  0x51   :  { %367 = vmatpush3.bf16.msra.mxu0 %v406_v2  ;;  %375 = vmatpush3.bf16.msra.mxu1 %v408_v5 }
  0x52   :  { %384 = vmatprep.subr.bf16.mxu0 %v539_v0  ;;  %376 = vmatprep.subr.bf16.mxu1 %v539_v0  ;;  %p510_p7 = por %p509_p6, %p508_p5 }
  0x54   :  { %369 = vmatmul.mubr.msk.bf16.vlgmr.msra.gmra.mrb[0].mxu0 %vm104_vm1, %v85_v6  ;;  %p511_p8 = pnand %p510_p7, %p504_p4 }
  0x55   :  { %392 = vmatprep.mubr.msk.bf16.mxu0 %vm540_vm0, %v539_v0  ;;  %377 = vmatpush3.bf16.msra.mxu1 %v409_v7 }
  0x56   :  { %378 = vmatprep.subr.bf16.mxu1 %v539_v0  ;;  %385 = vmatpush3.bf16.msra.mxu0 %v411_v9 }
  0x57   :  { %386 = vmatprep.subr.bf16.mxu0 %v539_v0 }
  0x59   :  { %379 = vmatpush3.bf16.msra.mxu1 %v410_v8 }
  0x5a   :  { %387 = vmatpush3.bf16.msra.mxu0 %v412_v10 }
  0x5b   :  { %388 = vmatprep.subr.bf16.mxu0 %v539_v0 }
  0x5e   :  { %389 = vmatpush3.bf16.msra.mxu0 %v413_v19 }
  0x5f   :  { %390 = vmatprep.subr.bf16.mxu0 %v539_v0 }
  0x62   :  { %391 = vmatpush3.bf16.msra.mxu0 %v414_v20 }
 0x127   :  { %v142_v12 = vpop.f32.mrb[0].mxu0 }
 0x128   :  { %v143_v13 = vadd.f32 %v335_v11, %v142_v12  ;;  %v370_v14 = vpop.f32.mrb[1].mxu0 }
 0x129   :  { %v145_v15 = vpop.f32.mrb[2].mxu0 }
 0x12a   :  { %v148_v16 = vmax.f32 %v143_v13, 0.0  ;;  %v371_v17 = vpop.f32.mrb[3].mxu0 }
 0x12c   :  { %v158_v18 = vpack.c.bf16 %v148_v16, %v148_v16 }
 0x12e   :  { %381 = vmatmul.mubr.msk.bf16.vlgmr.msra.gmra.mrb[0].mxu1 %vm189_vm2, %v158_v18 }
 0x201   :  { %v227_v22 = vpop.f32.mrb[0].mxu1 }
 0x202   :  { %v228_v23 = vadd.f32 %v339_v21, %v227_v22  ;;  %v382_v24 = vpop.f32.mrb[1].mxu1 }
 0x203   :  { %v230_v25 = vpop.f32.mrb[2].mxu1 }
 0x204   :  { %v233_v26 = vmax.f32 %v228_v23, 0.0  ;;  %v383_v27 = vpop.f32.mrb[3].mxu1 }
 0x206   :  { %v243_v28 = vpack.c.bf16 %v233_v26, %v233_v26 }
 0x208   :  { %393 = vmatmul.mubr.msk.bf16.vlgmr.msra.gmra.mrb[4].mxu0 %vm189_vm2, %v243_v28 }
 0x2db   :  { %v311_v30 = vpop.f32.mrb[4].mxu0 }
 0x2dc   :  { %v312_v31 = vadd.f32 %v345_v29, %v311_v30  ;;  %v394_v32 = vpop.f32.mrb[5].mxu0 }
 0x2dd   :  { %v314_v33 = vpop.f32.mrb[6].mxu0 }
 0x2de   :  { %317 = vst [vmem:[#allocation10] sm:$0xff] %v312_v31  ;;  %v395_v34 = vpop.f32.mrb[7].mxu0 }
 0x2df   :  { %514 = shalt.err (!%p511_p8)
}
 0x2e0   :  { %s515_s6 = scalar_lea.hbm %s678_s7, 128 }
 0x2e1   :  { %p516_p9 = scmp.ne.s32.totalorder %s678_s7, %s515_s6  ;;  %p519_p10 = scmp.lt.u32.totalorder %s515_s6, %s678_s7 }
 0x2e3   :  { %p521_p11 = pnand %p519_p10, %p516_p9 }
 0x2e5   :  { %524 = shalt.err (!%p521_p11)
}
 0x2e6   :  { %327 = dma.vmem_to_hbm [thread:$0]  %s325_s5, 128, %s678_s7, [#allocation4]  }
 0x2e7   :  { %531 = dma.done.wait [#allocation4], 128  }
 0x2e8   :  { %532 = vsyncadd [#allocation4], 4294967168 }
 0x2e9   :  { %331 = vsyncpa [#allocation3], 1 }
 0x2ea   :  { %332 = vsyncpa [#allocation6], 1 }
 0x2eb   :  { %333 = vsyncpa [#allocation9], 1 }
 0x2ec   :  { %334 = vsyncpa [#allocation4], 1 }

</bundles_post_ra>
